<compile_context>
chip_gen: v7x
topology: tpu7x:2x2x1
jax: 0.10.0
libtpu: 0.0.40
codegen_flags: <defaults>
</compile_context>

<pallas_src>
import math
import functools

import jax
import jax.numpy as jnp
from jax.experimental import pallas as pl
from jax.experimental.pallas import tpu as pltpu


def _round_up(x: int, m: int) -> int:
    return (x + m - 1) // m * m


def _vmem_capacity_bytes() -> int:
    try:
        return int(pltpu.get_tpu_info().vmem_capacity_bytes)
    except Exception:
        return 64 * 1024 * 1024  # smallest per-TensorCore VMEM (v7x)


# --------------------------- small-vocab one-hot path ------------------------

def _onehot_kernel(ids_ref, lut_ref, o_ref, *, scale: float, fold: int):
    # ids_ref: (TILE, 1) int32 token ids
    # lut_ref: (vocab, d_model) full table, resident in VMEM
    # o_ref:   (TILE // fold, fold * d_model) lane-dense output block
    ids = ids_ref[...]
    tile = ids.shape[0]
    vocab, d_model = lut_ref.shape
    col = jax.lax.broadcasted_iota(jnp.int32, (tile, vocab), 1)
    onehot = (ids == col).astype(lut_ref.dtype)
    emb = jnp.dot(onehot, lut_ref[...], preferred_element_type=jnp.float32)
    emb = emb * scale                       # scale the (TILE, D) result, not the one-hot
    if fold > 1:
        emb = emb.reshape(tile // fold, fold * d_model)
    o_ref[...] = emb.astype(o_ref.dtype)


def _onehot_path(ids_flat, lut, scale, tile_tokens, budget, table_budget, vmem_cap):
    (N,) = ids_flat.shape
    vocab, d_model = lut.shape
    itemsize = jnp.dtype(lut.dtype).itemsize

    # Lane-dense output folding for narrow d_model (masked vst.msk -> full vst).
    fold = 1
    if d_model < 128 and 128 % d_model == 0:
        fold = min(128 // d_model, 16)
    align = 8 * fold

    # Token-tile upper bound from the VMEM budget (review item): one-hot
    # intermediates + double-buffered ids/out blocks, table counted once more
    # than physically needed to absorb v7x megacore duplication.
    per_token = vocab * (4 + itemsize) + 2 * d_model * itemsize + 2 * 4
    tile_cap = max(align, (budget - table_budget) // per_token)
    tile = min(tile_tokens, tile_cap, _round_up(N, align))
    tile = max(align, (tile // align) * align)
    if tile >= 256:
        tile = (tile // 256) * 256          # MXU-friendly; 256 is a multiple of align

    n_pad = _round_up(N, tile)
    if n_pad != N:
        ids_flat = jnp.pad(ids_flat, (0, n_pad - N))   # pad id 0 (valid row), sliced off later
    ids2d = ids_flat.reshape(n_pad, 1)

    vmem_need = (table_budget
                 + 2 * tile * 4
                 + 2 * tile * d_model * itemsize
                 + tile * vocab * (4 + itemsize))
    vmem_limit = None
    if vmem_need > 32 * 1024 * 1024:
        # Device-derived cap: never request more than ~90% of physical VMEM
        # (v7x has only 64 MiB per TensorCore).
        vmem_limit = int(min(vmem_need + (4 << 20), int(0.9 * vmem_cap)))

    cost = pl.CostEstimate(
        flops=2 * n_pad * vocab * d_model,
        transcendentals=0,
        bytes_accessed=n_pad * 4 + vocab * d_model * itemsize
        + n_pad * d_model * itemsize,
    )

    kernel = functools.partial(_onehot_kernel, scale=scale, fold=fold)

    out = pl.pallas_call(
        kernel,
        out_shape=jax.ShapeDtypeStruct((n_pad // fold, fold * d_model), lut.dtype),
        grid_spec=pltpu.PrefetchScalarGridSpec(
            num_scalar_prefetch=0,
            grid=(n_pad // tile,),
            in_specs=[
                # Token ids, tiled along the token axis.
                pl.BlockSpec((tile, 1), lambda i: (i, 0)),
                # Full embedding table resident in VMEM (single copy per core,
                # no per-step DMA / double buffering).
                pl.BlockSpec(memory_space=pltpu.MemorySpace.VMEM),
            ],
            out_specs=pl.BlockSpec((tile // fold, fold * d_model),
                                   lambda i: (i, 0)),
        ),
        compiler_params=pltpu.CompilerParams(
            dimension_semantics=("parallel",),   # token axis shards across TCs
            vmem_limit_bytes=vmem_limit,
        ),
        cost_estimate=cost,
    )(ids2d, lut)

    return out.reshape(n_pad, d_model)


# --------------------------- large-vocab HBM gather path ---------------------

def _gather_kernel(ids_ref, lut_hbm, o_ref, rows, sem, *, scale: float, tile: int):
    # ids_ref: (n_pad,) int32 token ids in SMEM (scalar-prefetched)
    # lut_hbm: (vocab, d_model) table left in HBM (memory_space=pl.ANY)
    # o_ref:   (tile, d_model) output block in VMEM
    # rows:    (tile, d_model) VMEM staging buffer
    # sem:     (1,) DMA semaphore (all row copies are the same size, so one
    #          semaphore with one wait per issued copy is exact)
    base = pl.program_id(0) * tile

    @pl.loop(0, tile)
    def _(r):
        tok = ids_ref[base + r]
        pltpu.make_async_copy(
            lut_hbm.at[pl.ds(tok, 1), :],
            rows.at[pl.ds(r, 1), :],
            sem.at[0],
        ).start()

    @pl.loop(0, tile)
    def _(r):
        pltpu.make_async_copy(
            lut_hbm.at[pl.ds(0, 1), :],
            rows.at[pl.ds(r, 1), :],
            sem.at[0],
        ).wait()

    o_ref[...] = (rows[...] * scale).astype(o_ref.dtype)


def _gather_path(ids_flat, lut, scale, gather_tile):
    (N,) = ids_flat.shape
    vocab, d_model = lut.shape
    itemsize = jnp.dtype(lut.dtype).itemsize

    tile = min(gather_tile, _round_up(N, 8))
    tile = _round_up(tile, 8)
    n_pad = _round_up(N, tile)
    if n_pad != N:
        ids_flat = jnp.pad(ids_flat, (0, n_pad - N))

    cost = pl.CostEstimate(
        flops=0,
        transcendentals=0,
        bytes_accessed=n_pad * 4 + 2 * n_pad * d_model * itemsize,
    )

    kernel = functools.partial(_gather_kernel, scale=scale, tile=tile)

    return pl.pallas_call(
        kernel,
        out_shape=jax.ShapeDtypeStruct((n_pad, d_model), lut.dtype),
        grid_spec=pltpu.PrefetchScalarGridSpec(
            num_scalar_prefetch=1,           # ids -> SMEM, drive per-row DMAs
            grid=(n_pad // tile,),
            in_specs=[pl.BlockSpec(memory_space=pl.ANY)],   # table stays in HBM
            out_specs=pl.BlockSpec((tile, d_model), lambda i, ids: (i, 0)),
            scratch_shapes=[
                pltpu.VMEM((tile, d_model), lut.dtype),
                pltpu.SemaphoreType.DMA((1,)),
            ],
        ),
        compiler_params=pltpu.CompilerParams(
            dimension_semantics=("arbitrary",),
        ),
        cost_estimate=cost,
    )(ids_flat, lut)


# ----------------------------------- wrapper ---------------------------------

def embeddings_forward(x, lut, *, tile_tokens: int = 1024, gather_tile: int = 256,
                       onehot_vocab_max: int = 2048):
    """x: (B, S) integer token ids; lut: (vocab, d_model) embedding table."""
    B, S = x.shape
    vocab, d_model = lut.shape
    N = B * S
    scale = float(math.sqrt(d_model))
    itemsize = jnp.dtype(lut.dtype).itemsize
    ids_flat = x.reshape(N).astype(jnp.int32)

    vmem_cap = _vmem_capacity_bytes()
    budget = int(0.75 * vmem_cap)            # leave headroom for the pipeline
    table_bytes = vocab * d_model * itemsize
    # Under a "parallel" grid on v7x megacore each TensorCore may hold its own
    # copy of the resident table -> budget 2x conservatively.
    table_budget = 2 * table_bytes
    per_token = vocab * (4 + itemsize) + 2 * d_model * itemsize + 2 * 4

    use_onehot = (vocab <= onehot_vocab_max
                  and table_budget + 256 * per_token <= budget)

    if use_onehot:
        out_flat = _onehot_path(ids_flat, lut, scale, tile_tokens,
                                budget, table_budget, vmem_cap)
    else:
        out_flat = _gather_path(ids_flat, lut, scale, gather_tile)

    return out_flat[:N].reshape(B, S, d_model)


if __name__ == "__main__":
    key = jax.random.PRNGKey(0)

    # Case 1: lane-dense d_model, small vocab -> one-hot MXU path.
    B, S = 2, 8
    vocab, d_model = 512, 128
    k_lut, k_tok, key = jax.random.split(key, 3)
    lut = jax.random.normal(k_lut, (vocab, d_model), dtype=jnp.float32)
    x = jax.random.randint(k_tok, (B, S), 0, vocab, dtype=jnp.int32)

    out = jax.block_until_ready(embeddings_forward(x, lut))
    ref = lut[x] * math.sqrt(d_model)
    assert out.shape == (B, S, d_model)
    assert jnp.allclose(out, ref, atol=1e-5, rtol=1e-5)

    # Case 2: narrow d_model (=32) -> one-hot path with lane-dense folding.
    vocab2, d_model2 = 64, 32
    k_lut2, k_tok2, key = jax.random.split(key, 3)
    lut2 = jax.random.normal(k_lut2, (vocab2, d_model2), dtype=jnp.float32)
    x2 = jax.random.randint(k_tok2, (B, S), 0, vocab2, dtype=jnp.int32)

    out2 = jax.block_until_ready(embeddings_forward(x2, lut2))
    ref2 = lut2[x2] * math.sqrt(d_model2)
    assert out2.shape == (B, S, d_model2)
    assert jnp.allclose(out2, ref2, atol=1e-5, rtol=1e-5)

    # Case 3: larger vocab -> HBM row-gather path (scalar-prefetch + manual DMA).
    vocab3, d_model3 = 4096, 256
    k_lut3, k_tok3, key = jax.random.split(key, 3)
    lut3 = jax.random.normal(k_lut3, (vocab3, d_model3), dtype=jnp.float32)
    x3 = jax.random.randint(k_tok3, (B, S), 0, vocab3, dtype=jnp.int32)

    out3 = jax.block_until_ready(embeddings_forward(x3, lut3))
    ref3 = lut3[x3] * math.sqrt(d_model3)
    assert out3.shape == (B, S, d_model3)
    assert jnp.allclose(out3, ref3, atol=1e-5, rtol=1e-5)

    print("KERNEL_OK")
</pallas_src>

<mosaic_0001>
module attributes {stable_mosaic.version = 11 : i64} {
  func.func @_onehot_kernel(%arg0: i32, %arg1: memref<16x1xi32, #tpu.memory_space<vmem>>, %arg2: memref<512x128xf32, #tpu.memory_space<vmem>>, %arg3: memref<16x128xf32, #tpu.memory_space<vmem>>) attributes {dimension_semantics = [#tpu.dimension_semantics<parallel>], iteration_bounds = array<i64: 1>, scalar_prefetch = 0 : i64, scratch_operands = 0 : i64, tpu.core_type = #tpu.core_type<tc>, window_params = [{transform_indices = @transform_0, window_bounds = array<i64: 16, 1>}, {pipeline_mode = #tpu.pipeline_mode<synchronous>, transform_indices = @transform_1, window_bounds = array<i64: 512, 128>}, {transform_indices = @transform_2, window_bounds = array<i64: 16, 128>}]} {
    %c0 = arith.constant 0 : index
    %c0_0 = arith.constant 0 : index
    %0 = vector.load %arg1[%c0, %c0_0] : memref<16x1xi32, #tpu.memory_space<vmem>>, vector<16x1xi32>
    %1 = tpu.iota {dimensions = array<i32: 1>} : vector<16x512xi32>
    %2 = vector.broadcast %0 : vector<16x1xi32> to vector<16x512xi32>
    %3 = arith.cmpi eq, %2, %1 : vector<16x512xi32>
    %4 = arith.extui %3 : vector<16x512xi1> to vector<16x512xi32>
    %5 = arith.sitofp %4 : vector<16x512xi32> to vector<16x512xf32>
    %c0_1 = arith.constant 0 : index
    %c0_2 = arith.constant 0 : index
    %6 = vector.load %arg2[%c0_1, %c0_2] : memref<512x128xf32, #tpu.memory_space<vmem>>, vector<512x128xf32>
    %cst = arith.constant dense<0.000000e+00> : vector<16x128xf32>
    %7 = tpu.matmul %5, %6, %cst {dimension_numbers = #tpu.dot_dimension_numbers<[1], [0], [0], [1], [0, 0, 1, 1], [], []>} : vector<16x512xf32>, vector<512x128xf32>, vector<16x128xf32> -> vector<16x128xf32>
    %cst_3 = arith.constant 11.3137083 : f32
    %8 = vector.broadcast %cst_3 : f32 to vector<16x128xf32>
    %9 = arith.mulf %7, %8 : vector<16x128xf32>
    %c0_4 = arith.constant 0 : index
    %c0_5 = arith.constant 0 : index
    %10 = vector.load %arg3[%c0_4, %c0_5] : memref<16x128xf32, #tpu.memory_space<vmem>>, vector<16x128xf32>
    tpu.vector_store %arg3[%c0_4, %c0_5], %9 {strides = array<i32>} : memref<16x128xf32, #tpu.memory_space<vmem>>, vector<16x128xf32>,
    return
  }
  func.func @transform_0(%arg0: i32) -> (i32, i32) {
    %c0_i32 = arith.constant 0 : i32
    %c0_i32_0 = arith.constant 0 : i32
    return %arg0, %c0_i32 : i32, i32
  }
  func.func @transform_1(%arg0: i32) -> (i32, i32) {
    %c0_i32 = arith.constant 0 : i32
    %c0_i32_0 = arith.constant 0 : i32
    %c0_i32_1 = arith.constant 0 : i32
    return %c0_i32, %c0_i32_0 : i32, i32
  }
  func.func @transform_2(%arg0: i32) -> (i32, i32) {
    %c0_i32 = arith.constant 0 : i32
    %c0_i32_0 = arith.constant 0 : i32
    return %arg0, %c0_i32 : i32, i32
  }
}

</mosaic_0001>

<bundles_post_ra>
// kernel: tpu_custom_call.1
= control target key start
LH: loop header
LB: loop body
LE: loop exit
PB: predicated region body
PF: predicated region fallthrough
CT: control target
= control target key end

     0   :  { %7 = vsyncpa [#allocation3], 0  ;;  %s566_s0 = inlined_call_operand.vmem [shape: s32[16,1], index: 0, kind: input, shape index: {}]   ;;  %s567_s1 = inlined_call_operand.hbm [shape: f32[512,128], index: 1, kind: input, shape index: {}]   ;;  %s568_s2 = inlined_call_operand.hbm [shape: f32[16,128], index: 2, kind: output, shape index: {}]  }
   0x1   :  { %8 = vsyncpa [#allocation4], 0  ;;  %s509_s9 = smov [#allocation2]   ;;  %s461_s13 = scalar_lea.hbm %s567_s1, 8192 }
   0x2   :  { %s16_s10 = sshll.u32 %s509_s9, 4  ;;  %p462_p0 = scmp.ne.s32.totalorder %s567_s1, %s461_s13  ;;  %s17_s10 = int_to_ptr.vmem [resolvable:$true] %s16_s10 }
   0x3   :  { %p465_p1 = scmp.lt.u32.totalorder %s461_s13, %s567_s1 }
   0x5   :  { %p467_p2 = pnand %p465_p1, %p462_p0 }
   0x7   :  { %470 = shalt.err (!%p467_p2)
}
   0x8   :  { %s471_s18 = scalar_lea.vmem %s17_s10, 8192  ;;  %p476_p4 = scmp.lt.s32.totalorder %s17_s10, %s17_s10 }
   0x9   :  { %p472_p3 = scmp.ne.s32.totalorder %s17_s10, %s471_s18  ;;  %p477_p5 = scmp.lt.s32.totalorder %s471_s18, %s471_s18 }
   0xb   :  { %p478_p6 = por %p477_p5, %p476_p4 }
   0xd   :  { %p479_p7 = pnand %p478_p6, %p472_p3 }
   0xf   :  { %482 = shalt.err (!%p479_p7)
}
  0x10   :  { %s510_s19 = smov 128   ;;  %s511_s20 = smov 8  }
  0x11   :  { %22 = dma.hbm_to_vmem [thread:$0]  %s567_s1, 8192, %s17_s10, [#allocation3], %s510_s19, %s510_s19, %s511_s20  }
  0x12   :  { %505 = dma.done.wait [#allocation3], 8192  }
  0x13   :  { %506 = vsyncadd [#allocation3], 4294959104  ;;  %v512_v0 = vmov 0   ;;  %v26_v1 = vld [vmem:[%s566_s0] sm:$0xff]  ;;  %v27_v2 = vld [vmem:[%s566_s0 + $0x8] sm:$0xff]  ;;  %s514_s0 = smov [#allocation5]  }
  0x14   :  { %460 = vset.pattern.permute.xlu0 %v512_v0  ;;  %v79_v3 = vld [vmem:[#allocation2 + $0x80] sm:$0xff]  ;;  %v80_v4 = vld [vmem:[#allocation2 + $0x88] sm:$0xff]  ;;  %v81_v14 = vld [vmem:[#allocation2 + $0x90] sm:$0xff]  ;;  %s286_s1 = sshll.u32 %s514_s0, 4  ;;  %s287_s1 = int_to_ptr.vmem [resolvable:$true] %s286_s1 }
  0x15   :  { %34 = vperm.xlu0 %460, %v26_v1   ;;  %v111_v5 = vld [vmem:[#allocation2 + $0x180] sm:$0xff]  ;;  %v112_v6 = vld [vmem:[#allocation2 + $0x188] sm:$0xff]  ;;  %v390_v7 = vpack.c.bf16 %v80_v4, %v79_v3  ;;  %v82_v15 = vld [vmem:[#allocation2 + $0x98] sm:$0xff]  ;;  %s483_s27 = scalar_lea.vmem %s287_s1, 256  ;;  %p488_p9 = scmp.lt.s32.totalorder %s287_s1, %s287_s1 }
  0x16   :  { %v422_v8 = vpack.c.bf16 %v112_v6, %v111_v5  ;;  %v63_v9 = vld [vmem:[#allocation2] sm:$0xff]  ;;  %v64_v10 = vld [vmem:[#allocation2 + $0x8] sm:$0xff]  ;;  %v394_v17 = vpack.c.bf16 %v82_v15, %v81_v14  ;;  %v113_v18 = vld [vmem:[#allocation2 + $0x190] sm:$0xff]  ;;  %p484_p8 = scmp.ne.s32.totalorder %s287_s1, %s483_s27  ;;  %p489_p10 = scmp.lt.s32.totalorder %s483_s27, %s483_s27 }
  0x17   :  { %v95_v11 = vld [vmem:[#allocation2 + $0x100] sm:$0xff]  ;;  %v392_v12 = vpack.c.bf16 %v64_v10, %v63_v9  ;;  %v96_v13 = vld [vmem:[#allocation2 + $0x108] sm:$0xff]  ;;  %391 = vmatprep.subr.bf16.mxu0 %v390_v7  ;;  %v114_v19 = vld [vmem:[#allocation2 + $0x198] sm:$0xff] }
  0x18   :  { %423 = vmatprep.subr.bf16.mxu1 %v422_v8  ;;  %v424_v16 = vpack.c.bf16 %v96_v13, %v95_v11  ;;  %v65_v20 = vld [vmem:[#allocation2 + $0x10] sm:$0xff]  ;;  %v426_v21 = vpack.c.bf16 %v114_v19, %v113_v18  ;;  %v66_v22 = vld [vmem:[#allocation2 + $0x18] sm:$0xff]  ;;  %v83_v27 = vld [vmem:[#allocation2 + $0xa0] sm:$0xff]  ;;  %p490_p11 = por %p489_p10, %p488_p9 }
  0x19   :  { %37 = vperm.xlu0 %460, %v27_v2   ;;  %393 = vmatpush3.bf16.msra.mxu0 %v392_v12  ;;  %v97_v23 = vld [vmem:[#allocation2 + $0x110] sm:$0xff]  ;;  %v98_v24 = vld [vmem:[#allocation2 + $0x118] sm:$0xff]  ;;  %v396_v25 = vpack.c.bf16 %v66_v22, %v65_v20  ;;  %v84_v28 = vld [vmem:[#allocation2 + $0xa8] sm:$0xff] }
  0x1a   :  { %425 = vmatpush3.bf16.msra.mxu1 %v424_v16  ;;  %395 = vmatprep.subr.bf16.mxu0 %v394_v17  ;;  %v428_v26 = vpack.c.bf16 %v98_v24, %v97_v23  ;;  %v115_v29 = vld [vmem:[#allocation2 + $0x1a0] sm:$0xff]  ;;  %v398_v30 = vpack.c.bf16 %v84_v28, %v83_v27  ;;  %v116_v31 = vld [vmem:[#allocation2 + $0x1a8] sm:$0xff]  ;;  %v85_v37 = vld [vmem:[#allocation2 + $0xb0] sm:$0xff]  ;;  %p491_p12 = pnand %p490_p11, %p484_p8 }
  0x1b   :  { %427 = vmatprep.subr.bf16.mxu1 %v426_v21  ;;  %v67_v32 = vld [vmem:[#allocation2 + $0x20] sm:$0xff]  ;;  %v68_v33 = vld [vmem:[#allocation2 + $0x28] sm:$0xff]  ;;  %v430_v34 = vpack.c.bf16 %v116_v31, %v115_v29  ;;  %v86_v39 = vld [vmem:[#allocation2 + $0xb8] sm:$0xff] }
  0x1c   :  { %v99_v35 = vld [vmem:[#allocation2 + $0x120] sm:$0xff]  ;;  %v100_v36 = vld [vmem:[#allocation2 + $0x128] sm:$0xff]  ;;  %v400_v38 = vpack.c.bf16 %v68_v33, %v67_v32  ;;  %v117_v40 = vld [vmem:[#allocation2 + $0x1b0] sm:$0xff]  ;;  %v402_v43 = vpack.c.bf16 %v86_v39, %v85_v37 }
  0x1d   :  { %397 = vmatpush3.bf16.msra.mxu0 %v396_v25  ;;  %v118_v41 = vld [vmem:[#allocation2 + $0x1b8] sm:$0xff]  ;;  %v432_v42 = vpack.c.bf16 %v100_v36, %v99_v35  ;;  %v69_v44 = vld [vmem:[#allocation2 + $0x30] sm:$0xff]  ;;  %v87_v49 = vld [vmem:[#allocation2 + $0xc0] sm:$0xff]  ;;  %v28_v35 = vlaneseq }
  0x1e   :  { %429 = vmatpush3.bf16.msra.mxu1 %v428_v26  ;;  %399 = vmatprep.subr.bf16.mxu0 %v398_v30  ;;  %v70_v45 = vld [vmem:[#allocation2 + $0x38] sm:$0xff]  ;;  %v101_v46 = vld [vmem:[#allocation2 + $0x130] sm:$0xff]  ;;  %v434_v47 = vpack.c.bf16 %v118_v41, %v117_v40  ;;  %v88_v50 = vld [vmem:[#allocation2 + $0xc8] sm:$0xff]  ;;  %v513_v41 = vmov 1.0  }
  0x1f   :  { %431 = vmatprep.subr.bf16.mxu1 %v430_v34  ;;  %v102_v48 = vld [vmem:[#allocation2 + $0x138] sm:$0xff]  ;;  %v119_v51 = vld [vmem:[#allocation2 + $0x1c0] sm:$0xff]  ;;  %v120_v52 = vld [vmem:[#allocation2 + $0x1c8] sm:$0xff]  ;;  %v404_v53 = vpack.c.bf16 %v70_v45, %v69_v44  ;;  %v406_v55 = vpack.c.bf16 %v88_v50, %v87_v49  ;;  %v29_v36 = vand.u32 127, %v28_v35 }
  0x20   :  { %v436_v54 = vpack.c.bf16 %v102_v48, %v101_v46  ;;  %v71_v56 = vld [vmem:[#allocation2 + $0x40] sm:$0xff]  ;;  %v72_v57 = vld [vmem:[#allocation2 + $0x48] sm:$0xff]  ;;  %v438_v59 = vpack.c.bf16 %v120_v52, %v119_v51  ;;  %v89_v61 = vld [vmem:[#allocation2 + $0xd0] sm:$0xff] }
  0x21   :  { %401 = vmatpush3.bf16.msra.mxu0 %v400_v38  ;;  %v103_v58 = vld [vmem:[#allocation2 + $0x140] sm:$0xff]  ;;  %v104_v60 = vld [vmem:[#allocation2 + $0x148] sm:$0xff]  ;;  %v90_v62 = vld [vmem:[#allocation2 + $0xd8] sm:$0xff]  ;;  %v408_v1 = vpack.c.bf16 %v72_v57, %v71_v56  ;;  %v30_v37 = vadd.s32 128, %v29_v36  ;;  %v32_v38 = vadd.s32 384, %v29_v36  ;;  %v31_v39 = vadd.s32 256, %v29_v36 }
  0x22   :  { %433 = vmatpush3.bf16.msra.mxu1 %v432_v42  ;;  %403 = vmatprep.subr.bf16.mxu0 %v402_v43  ;;  %v121_v63 = vld [vmem:[#allocation2 + $0x1d0] sm:$0xff]  ;;  %v122_v0 = vld [vmem:[#allocation2 + $0x1d8] sm:$0xff]  ;;  %v440_v2 = vpack.c.bf16 %v104_v60, %v103_v58  ;;  %v410_v3 = vpack.c.bf16 %v90_v62, %v89_v61  ;;  %v91_v9 = vld [vmem:[#allocation2 + $0xe0] sm:$0xff] }
  0x23   :  { %435 = vmatprep.subr.bf16.mxu1 %v434_v47  ;;  %v73_v4 = vld [vmem:[#allocation2 + $0x50] sm:$0xff]  ;;  %v74_v5 = vld [vmem:[#allocation2 + $0x58] sm:$0xff]  ;;  %v442_v7 = vpack.c.bf16 %v122_v0, %v121_v63  ;;  %v92_v10 = vld [vmem:[#allocation2 + $0xe8] sm:$0xff] }
  0x24   :  { %v105_v6 = vld [vmem:[#allocation2 + $0x150] sm:$0xff]  ;;  %v106_v8 = vld [vmem:[#allocation2 + $0x158] sm:$0xff]  ;;  %v123_v11 = vld [vmem:[#allocation2 + $0x1e0] sm:$0xff]  ;;  %v412_v13 = vpack.c.bf16 %v74_v5, %v73_v4  ;;  %v414_v15 = vpack.c.bf16 %v92_v10, %v91_v9 }
  0x25   :  { %405 = vmatpush3.bf16.msra.mxu0 %v404_v53  ;;  %v124_v12 = vld [vmem:[#allocation2 + $0x1e8] sm:$0xff]  ;;  %v444_v14 = vpack.c.bf16 %v106_v8, %v105_v6  ;;  %v75_v16 = vld [vmem:[#allocation2 + $0x60] sm:$0xff]  ;;  %v93_v21 = vld [vmem:[#allocation2 + $0xf0] sm:$0xff] }
  0x26   :  { %437 = vmatpush3.bf16.msra.mxu1 %v436_v54  ;;  %407 = vmatprep.subr.bf16.mxu0 %v406_v55  ;;  %v76_v17 = vld [vmem:[#allocation2 + $0x68] sm:$0xff]  ;;  %v107_v18 = vld [vmem:[#allocation2 + $0x160] sm:$0xff]  ;;  %v446_v19 = vpack.c.bf16 %v124_v12, %v123_v11  ;;  %v94_v22 = vld [vmem:[#allocation2 + $0xf8] sm:$0xff] }
  0x27   :  { %439 = vmatprep.subr.bf16.mxu1 %v438_v59  ;;  %v108_v20 = vld [vmem:[#allocation2 + $0x168] sm:$0xff]  ;;  %v125_v23 = vld [vmem:[#allocation2 + $0x1f0] sm:$0xff]  ;;  %v126_v24 = vld [vmem:[#allocation2 + $0x1f8] sm:$0xff]  ;;  %v416_v25 = vpack.c.bf16 %v76_v17, %v75_v16  ;;  %v418_v27 = vpack.c.bf16 %v94_v22, %v93_v21 }
  0x28   :  { %v448_v26 = vpack.c.bf16 %v108_v20, %v107_v18  ;;  %v77_v28 = vld [vmem:[#allocation2 + $0x70] sm:$0xff]  ;;  %v78_v29 = vld [vmem:[#allocation2 + $0x78] sm:$0xff]  ;;  %v450_v30 = vpack.c.bf16 %v126_v24, %v125_v23 }
  0x29   :  { %409 = vmatpush3.bf16.msra.mxu0 %v408_v1  ;;  %v109_v31 = vld [vmem:[#allocation2 + $0x170] sm:$0xff]  ;;  %v110_v32 = vld [vmem:[#allocation2 + $0x178] sm:$0xff]  ;;  %v420_v33 = vpack.c.bf16 %v78_v29, %v77_v28 }
  0x2a   :  { %441 = vmatpush3.bf16.msra.mxu1 %v440_v2  ;;  %411 = vmatprep.subr.bf16.mxu0 %v410_v3  ;;  %v452_v34 = vpack.c.bf16 %v110_v32, %v109_v31 }
  0x2b   :  { %443 = vmatprep.subr.bf16.mxu1 %v442_v7 }
  0x2d   :  { %413 = vmatpush3.bf16.msra.mxu0 %v412_v13 }
  0x2e   :  { %445 = vmatpush3.bf16.msra.mxu1 %v444_v14  ;;  %415 = vmatprep.subr.bf16.mxu0 %v414_v15 }
  0x2f   :  { %447 = vmatprep.subr.bf16.mxu1 %v446_v19 }
  0x31   :  { %417 = vmatpush3.bf16.msra.mxu0 %v416_v25 }
  0x32   :  { %449 = vmatpush3.bf16.msra.mxu1 %v448_v26  ;;  %419 = vmatprep.subr.bf16.mxu0 %v418_v27 }
  0x33   :  { %451 = vmatprep.subr.bf16.mxu1 %v450_v30 }
  0x35   :  { %421 = vmatpush3.bf16.msra.mxu0 %v420_v33 }
  0x36   :  { %453 = vmatpush3.bf16.msra.mxu1 %v452_v34 }
  0x94   :  { %v35_v40 = vpop.permute.xlu0 %34 }
  0x95   :  { %vm40_vm0 = vcmp.eq.s32.totalorder %v35_v40, %v30_v37  ;;  %vm42_vm1 = vcmp.eq.s32.totalorder %v35_v40, %v32_v38  ;;  %vm39_vm2 = vcmp.eq.s32.totalorder %v35_v40, %v29_v36  ;;  %vm41_vm3 = vcmp.eq.s32.totalorder %v35_v40, %v31_v39 }
  0x96   :  { %306 = vmatprep.mubr.msk.f32.mxu0 %vm40_vm0, %v513_v41  ;;  %310 = vmatprep.mubr.msk.f32.mxu1 %vm42_vm1, %v513_v41 }
  0x97   :  { %307 = vmatmul.mubr.msk.f32.vlgmr.msra.gmra.mrb[0].mxu0 %vm39_vm2, %v513_v41  ;;  %311 = vmatmul.mubr.msk.f32.vlgmr.msra.gmra.mrb[0].mxu1 %vm41_vm3, %v513_v41 }
  0x98   :  { %v38_v42 = vpop.permute.xlu0 %37 }
  0x99   :  { %vm44_vm4 = vcmp.eq.s32.totalorder %v38_v42, %v30_v37  ;;  %vm46_vm5 = vcmp.eq.s32.totalorder %v38_v42, %v32_v38  ;;  %vm43_vm6 = vcmp.eq.s32.totalorder %v38_v42, %v29_v36  ;;  %vm45_vm7 = vcmp.eq.s32.totalorder %v38_v42, %v31_v39 }
  0x9a   :  { %308 = vmatprep.mubr.msk.f32.mxu0 %vm44_vm4, %v513_v41  ;;  %312 = vmatprep.mubr.msk.f32.mxu1 %vm46_vm5, %v513_v41 }
  0x9b   :  { %309 = vmatmul.mubr.msk.f32.gmra.mrb[2].mxu0 %vm43_vm6, %v513_v41  ;;  %313 = vmatmul.mubr.msk.f32.gmra.mrb[2].mxu1 %vm45_vm7, %v513_v41 }
 0x16a   :  { %v346_v43 = vpop.f32.mrb[0].mxu0  ;;  %v384_v44 = vpop.f32.mrb[0].mxu1 }
 0x16b   :  { %v347_v45 = vpop.f32.mrb[1].mxu0  ;;  %v385_v46 = vpop.f32.mrb[1].mxu1 }
 0x16c   :  { %v348_v47 = vadd.f32 %v347_v45, %v346_v43  ;;  %v386_v48 = vadd.f32 %v385_v46, %v384_v44 }
 0x16e   :  { %v269_v49 = vadd.f32 %v386_v48, %v348_v47  ;;  %v349_v50 = vpop.f32.mrb[2].mxu0  ;;  %v387_v51 = vpop.f32.mrb[2].mxu1 }
 0x16f   :  { %v350_v52 = vpop.f32.mrb[3].mxu0  ;;  %v388_v53 = vpop.f32.mrb[3].mxu1 }
 0x170   :  { %v277_v54 = vmul.f32 11.313708, %v269_v49  ;;  %v351_v55 = vadd.f32 %v350_v52, %v349_v50  ;;  %v389_v56 = vadd.f32 %v388_v53, %v387_v51 }
 0x172   :  { %279 = vst [vmem:[#allocation5] sm:$0xff] %v277_v54  ;;  %v274_v57 = vadd.f32 %v389_v56, %v351_v55 }
 0x174   :  { %v278_v58 = vmul.f32 11.313708, %v274_v57 }
 0x176   :  { %280 = vst [vmem:[#allocation5 + $0x8] sm:$0xff] %v278_v58 }
 0x177   :  { %494 = shalt.err (!%p491_p12)
}
 0x178   :  { %s495_s30 = scalar_lea.hbm %s568_s2, 256 }
 0x179   :  { %p496_p13 = scmp.ne.s32.totalorder %s568_s2, %s495_s30  ;;  %p499_p0 = scmp.lt.u32.totalorder %s495_s30, %s568_s2 }
 0x17b   :  { %p501_p1 = pnand %p499_p0, %p496_p13 }
 0x17d   :  { %504 = shalt.err (!%p501_p1)
}
 0x17e   :  { %292 = dma.vmem_to_hbm [thread:$0]  %s287_s1, 256, %s568_s2, [#allocation4], %s510_s19, %s510_s19, %s511_s20  }
 0x17f   :  { %507 = dma.done.wait [#allocation4], 256  }
 0x180   :  { %508 = vsyncadd [#allocation4], 4294967040 }
 0x181   :  { %296 = vsyncpa [#allocation3], 1 }
 0x182   :  { %297 = vsyncpa [#allocation4], 1 }

</bundles_post_ra>
